<compile_context>
chip_gen: v5e
topology: v5e:2x2
jax: 0.10.0
libtpu: 0.0.40
codegen_flags: <defaults>
</compile_context>

<pallas_src>
import jax
import jax.numpy as jnp
from jax.experimental import pallas as pl
from jax.experimental.pallas import tpu as pltpu


_VMEM_BUDGET = 12 * 1024 * 1024  # conservative: fits v5e's 16 MiB default scoped VMEM


def _round_up(x, m):
    return ((x + m - 1) // m) * m


def _pad2(a, rows, cols):
    pr, pc = rows - a.shape[0], cols - a.shape[1]
    if pr or pc:
        a = jnp.pad(a, ((0, pr), (0, pc)))
    return a


def _pick_tile(dim_pad, granule, max_tile, min_tiles=1):
    """Largest multiple of `granule` that divides `dim_pad`, is <= `max_tile`,
    and leaves at least `min_tiles` grid tiles when possible.  Falls back to
    `granule` (which always divides the rounded `dim_pad`)."""
    best = granule
    limit = min(dim_pad, max_tile)
    cand = granule
    while cand <= limit:
        if dim_pad % cand == 0 and (dim_pad // cand) >= min_tiles:
            best = cand
        cand += granule
    return best


# ---------------------------------------------------------------------------
# Fast path: W and bias fully resident in VMEM, grid over M only.
# ---------------------------------------------------------------------------
def _linear_resident_kernel(x_ref, w_ref, b_ref, o_ref):
    # x_ref: (TM, K) ; w_ref: (K, N) ; b_ref: (1, N) ; o_ref: (TM, N)
    o_ref[...] = (
        jnp.dot(x_ref[...], w_ref[...], preferred_element_type=jnp.float32)
        + b_ref[...]
    ).astype(o_ref.dtype)


# ---------------------------------------------------------------------------
# Fallback: (M, N, K) grid; accumulate directly into the resident f32 output
# block, initialized with the broadcast bias on the first K step.
# ---------------------------------------------------------------------------
def _linear_tiled_kernel(x_ref, w_ref, b_ref, o_ref):
    k = pl.program_id(2)

    @pl.when(k == 0)
    def _():
        o_ref[...] = jnp.broadcast_to(b_ref[...], o_ref.shape)

    o_ref[...] += jnp.dot(
        x_ref[...], w_ref[...], preferred_element_type=jnp.float32
    )


def multiclass_svm_forward(x, weight, bias, *, tm=512, tn=256, tk=1024):
    """Pallas equivalent of MultiClassSVM.forward: scores = x @ W.T + b.

    Args:
        x:      (batch, input_dim) float
        weight: (num_classes, input_dim) float   (torch nn.Linear layout)
        bias:   (num_classes,) float
    Returns:
        scores: (batch, num_classes) float32
    """
    batch, input_dim = x.shape
    num_classes, wd = weight.shape
    assert wd == input_dim, "weight.shape[1] must equal x.shape[1]"

    # Lane/sublane-aligned extents: a single 8/128 granule, never tile-rounded.
    m_pad = _round_up(batch, 8)
    n_pad = _round_up(num_classes, 128)
    k_pad = _round_up(input_dim, 128)

    # One-time layout plumbing (zero padding keeps the dot exact); the pads are
    # skipped entirely when the shapes are already aligned.
    x_p = _pad2(x.astype(jnp.float32), m_pad, k_pad)
    w_t = _pad2(weight.astype(jnp.float32).T, k_pad, n_pad)  # (K, N): MXU-native
    b_p = bias.astype(jnp.float32)
    if n_pad > num_classes:
        b_p = jnp.pad(b_p, (0, n_pad - num_classes))
    b_p = b_p.reshape(1, n_pad)

    cost = pl.CostEstimate(
        flops=2 * m_pad * n_pad * k_pad,
        transcendentals=0,
        bytes_accessed=4 * (m_pad * k_pad + k_pad * n_pad + n_pad + m_pad * n_pad),
    )

    # Prefer >= 2 parallel M tiles whenever possible so both v7x TCs get work.
    m_min_tiles = 2 if m_pad >= 16 else 1

    # ---- fast path: double-buffered W comfortably fits in VMEM --------------
    w_resident_bytes = 2 * k_pad * n_pad * 4
    if n_pad <= 512 and w_resident_bytes <= 6 * 1024 * 1024:
        fixed = w_resident_bytes + 2 * n_pad * 4
        per_row = 2 * (k_pad + n_pad) * 4        # double-buffered x tile + out tile
        max_rows = max((_VMEM_BUDGET - fixed) // per_row, 8)
        tm_r = _pick_tile(m_pad, 8, min(tm, max_rows), m_min_tiles)

        out = pl.pallas_call(
            _linear_resident_kernel,
            out_shape=jax.ShapeDtypeStruct((m_pad, n_pad), jnp.float32),
            grid_spec=pltpu.PrefetchScalarGridSpec(
                num_scalar_prefetch=0,
                grid=(m_pad // tm_r,),
                in_specs=[
                    pl.BlockSpec((tm_r, k_pad), lambda i: (i, 0)),
                    pl.BlockSpec((k_pad, n_pad), lambda i: (0, 0)),  # W resident
                    pl.BlockSpec((1, n_pad), lambda i: (0, 0)),      # b resident
                ],
                out_specs=pl.BlockSpec((tm_r, n_pad), lambda i: (i, 0)),
            ),
            compiler_params=pltpu.CompilerParams(
                dimension_semantics=("parallel",),
            ),
            cost_estimate=cost,
        )(x_p, w_t, b_p)

    # ---- fallback: large W -> (M, N, K) grid with bias-initialized output ---
    else:
        tm_t = _pick_tile(m_pad, 8, tm, m_min_tiles)
        tn_t = _pick_tile(n_pad, 128, tn)
        tk_t = _pick_tile(k_pad, 128, tk)
        # Shrink until the double-buffered footprint fits the VMEM budget.
        while True:
            footprint = 2 * 4 * (tm_t * tk_t + tk_t * tn_t + tm_t * tn_t + tn_t)
            if footprint <= _VMEM_BUDGET or (
                tm_t == 8 and tn_t == 128 and tk_t == 128
            ):
                break
            if tk_t > 128:
                tk_t = _pick_tile(k_pad, 128, tk_t // 2)
            elif tm_t > 8:
                tm_t = _pick_tile(m_pad, 8, tm_t // 2, m_min_tiles)
            else:
                tn_t = _pick_tile(n_pad, 128, tn_t // 2)

        grid = (m_pad // tm_t, n_pad // tn_t, k_pad // tk_t)
        out = pl.pallas_call(
            _linear_tiled_kernel,
            out_shape=jax.ShapeDtypeStruct((m_pad, n_pad), jnp.float32),
            grid_spec=pltpu.PrefetchScalarGridSpec(
                num_scalar_prefetch=0,
                grid=grid,
                in_specs=[
                    pl.BlockSpec((tm_t, tk_t), lambda i, j, k: (i, k)),
                    pl.BlockSpec((tk_t, tn_t), lambda i, j, k: (k, j)),
                    pl.BlockSpec((1, tn_t), lambda i, j, k: (0, j)),
                ],
                out_specs=pl.BlockSpec((tm_t, tn_t), lambda i, j, k: (i, j)),
            ),
            compiler_params=pltpu.CompilerParams(
                dimension_semantics=("parallel", "parallel", "arbitrary"),
            ),
            cost_estimate=cost,
        )(x_p, w_t, b_p)

    # Strip padded rows / classes (no-op slice when already aligned) so
    # predict()'s argmax never sees padded class columns.
    return out[:batch, :num_classes]


def multiclass_svm_predict(x, weight, bias):
    """Pallas equivalent of MultiClassSVM.predict: argmax over class scores."""
    scores = multiclass_svm_forward(x, weight, bias)
    return jnp.argmax(scores, axis=1)


def _make_params(key, batch, input_dim, num_classes):
    kx, kw, kb = jax.random.split(key, 3)
    x = jax.random.normal(kx, (batch, input_dim), dtype=jnp.float32)
    bound = 1.0 / (input_dim ** 0.5)  # nn.Linear default init range
    weight = jax.random.uniform(
        kw, (num_classes, input_dim), minval=-bound, maxval=bound,
        dtype=jnp.float32,
    )
    bias = jax.random.uniform(
        kb, (num_classes,), minval=-bound, maxval=bound, dtype=jnp.float32
    )
    return x, weight, bias


if __name__ == "__main__":
    key = jax.random.PRNGKey(0)
    k_small, k_mid = jax.random.split(key)

    # Case 1: small shapes consistent with the module (toy SVM);
    # exercises the resident-W fast path with a single M tile.
    x, w, b = _make_params(k_small, batch=8, input_dim=32, num_classes=8)
    scores = multiclass_svm_forward(x, w, b)
    jax.block_until_ready(scores)
    ref = x @ w.T + b
    assert scores.shape == (8, 8)
    assert jnp.allclose(scores, ref, atol=1e-5, rtol=1e-5)

    preds = multiclass_svm_predict(x, w, b)
    jax.block_until_ready(preds)
    assert preds.shape == (8,)
    assert jnp.array_equal(preds, jnp.argmax(ref, axis=1))

    # Case 2: non-aligned shapes -> minimal 8/128 padding, two parallel M
    # tiles (divisor-based tile selection: m_pad=304 -> tm=152).
    x2, w2, b2 = _make_params(k_mid, batch=300, input_dim=640, num_classes=24)
    scores2 = multiclass_svm_forward(x2, w2, b2)
    jax.block_until_ready(scores2)
    ref2 = x2 @ w2.T + b2
    assert scores2.shape == (300, 24)
    assert jnp.allclose(scores2, ref2, atol=1e-4, rtol=1e-4)

    preds2 = multiclass_svm_predict(x2, w2, b2)
    jax.block_until_ready(preds2)
    assert preds2.shape == (300,)
    assert bool(jnp.all(preds2 < 24))

    print("KERNEL_OK")
</pallas_src>

<mosaic_0001>
module attributes {stable_mosaic.version = 11 : i64} {
  func.func @_linear_resident_kernel(%arg0: i32, %arg1: memref<8x128xf32, #tpu.memory_space<vmem>>, %arg2: memref<128x128xf32, #tpu.memory_space<vmem>>, %arg3: memref<1x128xf32, #tpu.memory_space<vmem>>, %arg4: memref<8x128xf32, #tpu.memory_space<vmem>>) attributes {dimension_semantics = [#tpu.dimension_semantics<parallel>], iteration_bounds = array<i64: 1>, scalar_prefetch = 0 : i64, scratch_operands = 0 : i64, tpu.core_type = #tpu.core_type<tc>, window_params = [{transform_indices = @transform_0, window_bounds = array<i64: 8, 128>}, {pipeline_mode = #tpu.pipeline_mode<synchronous>, transform_indices = @transform_1, window_bounds = array<i64: 128, 128>}, {pipeline_mode = #tpu.pipeline_mode<synchronous>, transform_indices = @transform_2, window_bounds = array<i64: 1, 128>}, {transform_indices = @transform_3, window_bounds = array<i64: 8, 128>}]} {
    %c0 = arith.constant 0 : index
    %c0_0 = arith.constant 0 : index
    %0 = vector.load %arg1[%c0, %c0_0] : memref<8x128xf32, #tpu.memory_space<vmem>>, vector<8x128xf32>
    %c0_1 = arith.constant 0 : index
    %c0_2 = arith.constant 0 : index
    %1 = vector.load %arg2[%c0_1, %c0_2] : memref<128x128xf32, #tpu.memory_space<vmem>>, vector<128x128xf32>
    %cst = arith.constant dense<0.000000e+00> : vector<8x128xf32>
    %2 = tpu.matmul %0, %1, %cst {dimension_numbers = #tpu.dot_dimension_numbers<[1], [0], [0], [1], [0, 0, 1, 1], [], []>} : vector<8x128xf32>, vector<128x128xf32>, vector<8x128xf32> -> vector<8x128xf32>
    %c0_3 = arith.constant 0 : index
    %c0_4 = arith.constant 0 : index
    %3 = vector.load %arg3[%c0_3, %c0_4] : memref<1x128xf32, #tpu.memory_space<vmem>>, vector<1x128xf32>
    %4 = vector.broadcast %3 : vector<1x128xf32> to vector<8x128xf32>
    %5 = arith.addf %2, %4 : vector<8x128xf32>
    %c0_5 = arith.constant 0 : index
    %c0_6 = arith.constant 0 : index
    %6 = vector.load %arg4[%c0_5, %c0_6] : memref<8x128xf32, #tpu.memory_space<vmem>>, vector<8x128xf32>
    tpu.vector_store %arg4[%c0_5, %c0_6], %5 {strides = array<i32>} : memref<8x128xf32, #tpu.memory_space<vmem>>, vector<8x128xf32>,
    return
  }
  func.func @transform_0(%arg0: i32) -> (i32, i32) {
    %c0_i32 = arith.constant 0 : i32
    %c0_i32_0 = arith.constant 0 : i32
    return %arg0, %c0_i32 : i32, i32
  }
  func.func @transform_1(%arg0: i32) -> (i32, i32) {
    %c0_i32 = arith.constant 0 : i32
    %c0_i32_0 = arith.constant 0 : i32
    %c0_i32_1 = arith.constant 0 : i32
    return %c0_i32, %c0_i32_0 : i32, i32
  }
  func.func @transform_2(%arg0: i32) -> (i32, i32) {
    %c0_i32 = arith.constant 0 : i32
    %c0_i32_0 = arith.constant 0 : i32
    %c0_i32_1 = arith.constant 0 : i32
    return %c0_i32, %c0_i32_0 : i32, i32
  }
  func.func @transform_3(%arg0: i32) -> (i32, i32) {
    %c0_i32 = arith.constant 0 : i32
    %c0_i32_0 = arith.constant 0 : i32
    return %arg0, %c0_i32 : i32, i32
  }
}

</mosaic_0001>

<bundles_post_ra>
// kernel: tpu_custom_call.1
= control target key start
LH: loop header
LB: loop body
LE: loop exit
PB: predicated region body
PF: predicated region fallthrough
CT: control target
= control target key end

     0   :  { %8 = vsyncpa [#allocation3], 0  ;;  %s226_s0 = inlined_call_operand.hbm [shape: f32[8,128], index: 0, kind: input, shape index: {}]   ;;  %s227_s1 = inlined_call_operand.hbm [shape: f32[128,128], index: 1, kind: input, shape index: {}]   ;;  %s228_s2 = inlined_call_operand.vmem [shape: f32[1,128], index: 2, kind: input, shape index: {}]   ;;  %s229_s3 = inlined_call_operand.hbm [shape: f32[8,128], index: 3, kind: output, shape index: {}]  }
   0x1   :  { %9 = vsyncpa [#allocation6], 0 }
   0x2   :  { %10 = vsyncpa [#allocation4], 0  ;;  %s16_s14 = sshll.u32 %s226_s0, 4  ;;  %s189_s15 = smov [#allocation2]   ;;  %s17_s14 = int_to_ptr.hbm [resolvable:$true] %s16_s14 }
   0x3   :  { %s18_s16 = sshll.u32 %s189_s15, 4  ;;  %s26_s19 = sshll.u32 %s227_s1, 4  ;;  %s19_s16 = int_to_ptr.vmem [resolvable:$true] %s18_s16  ;;  %s27_s19 = int_to_ptr.hbm [resolvable:$true] %s26_s19 }
   0x4   :  { %21 = dma.hbm_to_vmem [thread:$0]  %s17_s14, 128, %s19_s16, [#allocation3]  }
   0x5   :  { %s190_s20 = smov [#allocation5]   ;;  %s191_s22 = smov 128  }
   0x6   :  { %s28_s21 = sshll.u32 %s190_s20, 4  ;;  %s192_s23 = smov 8   ;;  %s29_s21 = int_to_ptr.vmem [resolvable:$true] %s28_s21 }
   0x7   :  { %34 = dma.hbm_to_vmem [thread:$0]  %s27_s19, 2048, %s29_s21, [#allocation6], %s191_s22, %s191_s22, %s192_s23  }
   0x8   :  { %183 = dma.done.wait [#allocation3], 128  }
   0x9   :  { %184 = vsyncadd [#allocation3], 4294967168 }
   0xa   :  { %185 = dma.done.wait [#allocation6], 2048  }
   0xb   :  { %186 = vsyncadd [#allocation6], 4294965248  ;;  %v61_v0 = vld [vmem:[#allocation5 + $0x78] sm:$0xff]  ;;  %v60_v1 = vld [vmem:[#allocation5 + $0x70] sm:$0xff]  ;;  %s193_s24 = smov [#allocation7]   ;;  %s94_s28 = sshll.u32 %s229_s3, 4  ;;  %s95_s28 = int_to_ptr.hbm [resolvable:$true] %s94_s28 }
   0xc   :  { %66 = vmatpush.msra.mxu0 %v61_v0  ;;  %v59_v2 = vld [vmem:[#allocation5 + $0x68] sm:$0xff]  ;;  %v58_v3 = vld [vmem:[#allocation5 + $0x60] sm:$0xff]  ;;  %v57_v4 = vld [vmem:[#allocation5 + $0x58] sm:$0xff]  ;;  %s92_s25 = sshll.u32 %s193_s24, 4  ;;  %s93_s25 = int_to_ptr.vmem [resolvable:$true] %s92_s25 }
   0xd   :  { %v56_v5 = vld [vmem:[#allocation5 + $0x50] sm:$0xff]  ;;  %v55_v6 = vld [vmem:[#allocation5 + $0x48] sm:$0xff]  ;;  %v54_v7 = vld [vmem:[#allocation5 + $0x40] sm:$0xff] }
   0xe   :  { %67 = vmatpush.msra.mxu0 %v60_v1  ;;  %v53_v8 = vld [vmem:[#allocation5 + $0x38] sm:$0xff]  ;;  %v52_v9 = vld [vmem:[#allocation5 + $0x30] sm:$0xff]  ;;  %v51_v10 = vld [vmem:[#allocation5 + $0x28] sm:$0xff] }
   0xf   :  { %v50_v11 = vld [vmem:[#allocation5 + $0x20] sm:$0xff]  ;;  %v49_v12 = vld [vmem:[#allocation5 + $0x18] sm:$0xff]  ;;  %v48_v13 = vld [vmem:[#allocation5 + $0x10] sm:$0xff] }
  0x10   :  { %68 = vmatpush.msra.mxu0 %v59_v2  ;;  %v47_v14 = vld [vmem:[#allocation5 + $0x8] sm:$0xff]  ;;  %v46_v15 = vld [vmem:[#allocation5] sm:$0xff]  ;;  %v45_v16 = vld [vmem:[#allocation2] sm:$0xff] }
  0x11   :  { %v110_v17 = vld [vmem:[%s228_s2] ss:$0 sm:$0xff] }
  0x12   :  { %69 = vmatpush.msra.mxu0 %v58_v3 }
  0x14   :  { %70 = vmatpush.msra.mxu0 %v57_v4 }
  0x16   :  { %71 = vmatpush.msra.mxu0 %v56_v5 }
  0x18   :  { %72 = vmatpush.msra.mxu0 %v55_v6 }
  0x1a   :  { %73 = vmatpush.msra.mxu0 %v54_v7 }
  0x1c   :  { %74 = vmatpush.msra.mxu0 %v53_v8 }
  0x1e   :  { %75 = vmatpush.msra.mxu0 %v52_v9 }
  0x20   :  { %76 = vmatpush.msra.mxu0 %v51_v10 }
  0x22   :  { %77 = vmatpush.msra.mxu0 %v50_v11 }
  0x24   :  { %78 = vmatpush.msra.mxu0 %v49_v12 }
  0x26   :  { %79 = vmatpush.msra.mxu0 %v48_v13 }
  0x28   :  { %80 = vmatpush.msra.mxu0 %v47_v14 }
  0x2a   :  { %81 = vmatpush.msra.mxu0 %v46_v15 }
  0x2b   :  { %82 = vmatmul.f32.vlgmr.msra.gmra.mxu0 %v45_v16 }
  0xa8   :  { %v83_v18 = vpop.f32.mrf.mxu0 }
  0xa9   :  { %v84_v19 = vadd.f32 %v110_v17, %v83_v18 }
  0xab   :  { %86 = vst [vmem:[#allocation7] sm:$0xff] %v84_v19 }
  0xac   :  { %97 = dma.vmem_to_hbm [thread:$0]  %s93_s25, 128, %s95_s28, [#allocation4]  }
  0xad   :  { %187 = dma.done.wait [#allocation4], 128  }
  0xae   :  { %188 = vsyncadd [#allocation4], 4294967168 }
  0xaf   :  { %102 = vsyncpa [#allocation3], 1 }
  0xb0   :  { %103 = vsyncpa [#allocation6], 1 }
  0xb1   :  { %104 = vsyncpa [#allocation4], 1 }

</bundles_post_ra>
